<compile_context>
chip_gen: v5e
topology: v5e:2x2
jax: 0.10.0
libtpu: 0.0.40
codegen_flags: <defaults>
</compile_context>

<pallas_src>
import jax
import jax.numpy as jnp
from jax.experimental import pallas as pl
from jax.experimental.pallas import tpu as pltpu

_LANES = 128


def _round_up(n, m):
    return ((n + m - 1) // m) * m


def _cdiv(a, b):
    return -(-a // b)


def _compiler_params(**kw):
    cls = getattr(pltpu, "CompilerParams", None) or getattr(pltpu, "TPUCompilerParams")
    try:
        return cls(**kw)
    except TypeError:
        kw.pop("vmem_limit_bytes", None)
        return cls(**kw)


# ----------------------------------------------------------------------------
# Kernel 1: forward diffusion (q-sample)
#   out = sqrt(alpha_cumprod[t]) * x + sqrt(1 - alpha_cumprod[t]) * noise
# ----------------------------------------------------------------------------
def forward_kernel(scale_ref, x_ref, noise_ref, out_ref):
    # scale_ref: SMEM (2,) f32 = [sqrt(a_t), sqrt(1 - a_t)]
    # x_ref / noise_ref / out_ref: VMEM (TR, 128) tiles of the lane-dense view.
    out_ref[...] = scale_ref[0] * x_ref[...] + scale_ref[1] * noise_ref[...]


def diffusion_forward(x, t, alpha_cumprod, key, *, row_tile=512):
    """q-sample with i.i.d. N(0,1) noise (same semantics as torch.randn_like)."""
    B, F = x.shape
    total = B * F

    # Lane-dense (rows, 128) view so every vector load/store is a full vreg;
    # row-tiled so DMA-in -> compute -> DMA-out pipeline and VMEM stays bounded.
    rows = _cdiv(total, _LANES)
    tr = min(row_tile, _round_up(rows, 8))        # 8-aligned sublane tile
    rows_p = _round_up(rows, tr)
    pad = rows_p * _LANES - total

    x_flat = x.reshape(-1)
    if pad:
        x_flat = jnp.pad(x_flat, (0, pad))
    x2d = x_flat.reshape(rows_p, _LANES)

    # TODO(synk): noise is drawn host-side with jax.random; pltpu.prng_seed /
    # stateful_normal has no CPU/interpret lowering, so on-chip generation is
    # not portable. Semantics (i.i.d. standard normal) are unchanged.
    noise2d = jax.random.normal(key, (rows_p, _LANES), dtype=x.dtype)

    # Precompute the two scalars once (no per-call schedule DMA / in-kernel sqrt).
    alpha_t = alpha_cumprod[t]
    scales = jnp.stack([jnp.sqrt(alpha_t),
                        jnp.sqrt(1.0 - alpha_t)]).astype(jnp.float32)

    out2d = pl.pallas_call(
        forward_kernel,
        out_shape=jax.ShapeDtypeStruct((rows_p, _LANES), x.dtype),
        grid=(rows_p // tr,),
        in_specs=[
            pl.BlockSpec(memory_space=pltpu.MemorySpace.SMEM),   # scales
            pl.BlockSpec((tr, _LANES), lambda i: (i, 0)),        # x tile
            pl.BlockSpec((tr, _LANES), lambda i: (i, 0)),        # noise tile
        ],
        out_specs=pl.BlockSpec((tr, _LANES), lambda i: (i, 0)),
        compiler_params=_compiler_params(dimension_semantics=("parallel",)),
    )(scales, x2d, noise2d)

    out = out2d.reshape(-1)
    if pad:
        out = out[:total]
    return out.reshape(B, F)


# ----------------------------------------------------------------------------
# Kernel 2: reverse() MLP 784 -> 256 -> 256 -> 784 (bf16 MXU, f32 accumulate)
# ----------------------------------------------------------------------------
def mlp_kernel(x_ref, w1_ref, b1_ref, w2_ref, b2_ref, w3_ref, b3_ref, out_ref):
    # x tile: (TM, 784) ; weights bf16 [in, out] (VMEM-resident) ; biases f32 (1, out)
    x = x_ref[...].astype(jnp.bfloat16)
    h1 = jnp.dot(x, w1_ref[...], preferred_element_type=jnp.float32)
    h1 = jnp.maximum(h1 + b1_ref[...], 0.0)                       # f32 epilogue
    h2 = jnp.dot(h1.astype(jnp.bfloat16), w2_ref[...],
                 preferred_element_type=jnp.float32)
    h2 = jnp.maximum(h2 + b2_ref[...], 0.0)
    h3 = jnp.dot(h2.astype(jnp.bfloat16), w3_ref[...],
                 preferred_element_type=jnp.float32)
    out_ref[...] = (h3 + b3_ref[...]).astype(out_ref.dtype)


def _resident(shape):
    # Constant-index blocks stay in VMEM; single-buffer them when the API
    # allows (saves the default second copy of the ~0.9 MiB weight set).
    try:
        return pl.BlockSpec(shape, lambda i: (0, 0), pipeline_mode=pl.Buffered(1))
    except (AttributeError, TypeError):
        return pl.BlockSpec(shape, lambda i: (0, 0))


def diffusion_reverse(x, params, *, block_m=512):
    """params: pre-transposed weights wN [in, out] (bf16) and biases bN (1, out) f32.
    Activations stream at x.dtype (use bf16 to halve HBM traffic)."""
    B, F = x.shape
    assert F == 784

    # Tile choice: <8 rows of padding, and >=2 tiles whenever B allows so the
    # "parallel" batch axis lights up both v7x TensorCores.
    n_tiles = max(1, _cdiv(B, block_m))
    if B >= 16:
        n_tiles = max(2, n_tiles)
    tm = _round_up(_cdiv(B, n_tiles), 8)
    Bp = _round_up(B, tm)
    if Bp != B:
        x = jnp.pad(x, ((0, Bp - B), (0, 0)))
    grid = (Bp // tm,)

    w1, b1 = params["w1"], params["b1"]
    w2, b2 = params["w2"], params["b2"]
    w3, b3 = params["w3"], params["b3"]

    act_bytes = jnp.dtype(x.dtype).itemsize
    weight_bytes = sum(int(w.size) * w.dtype.itemsize for w in (w1, w2, w3))
    bias_bytes = sum(int(b.size) * b.dtype.itemsize for b in (b1, b2, b3))
    est = (4 * tm * 784 * act_bytes              # double-buffered in + out tiles
           + 2 * (weight_bytes + bias_bytes)     # resident params (<=2 buffers)
           + tm * (256 + 256 + 784) * 4)         # f32 intermediates
    vmem_limit = int(min(64 * 1024 * 1024, 2 * est + (8 << 20)))

    out = pl.pallas_call(
        mlp_kernel,
        out_shape=jax.ShapeDtypeStruct((Bp, 784), x.dtype),
        grid=grid,
        in_specs=[
            pl.BlockSpec((tm, 784), lambda i: (i, 0)),   # x batch tile
            _resident(w1.shape), _resident(b1.shape),
            _resident(w2.shape), _resident(b2.shape),
            _resident(w3.shape), _resident(b3.shape),
        ],
        out_specs=pl.BlockSpec((tm, 784), lambda i: (i, 0)),
        compiler_params=_compiler_params(
            dimension_semantics=("parallel",),
            vmem_limit_bytes=vmem_limit),
    )(x, w1, b1, w2, b2, w3, b3)
    return out[:B] if Bp != B else out


# ----------------------------------------------------------------------------
# Deterministic parameter / schedule construction (mirrors __init__)
# ----------------------------------------------------------------------------
def build_schedule(num_timesteps=1000, beta_start=1e-4, beta_end=0.02):
    betas = jnp.linspace(beta_start, beta_end, num_timesteps, dtype=jnp.float32)
    alphas = 1.0 - betas
    return jnp.cumprod(alphas, axis=0)


def build_mlp_params(key, weight_dtype=jnp.bfloat16):
    # nn.Sequential(Linear(784,256), ReLU, Linear(256,256), ReLU, Linear(256,784))
    # Weights stored once as [in, out] (kernel-ready, no per-call transpose) in
    # bf16; biases stay f32 and are shaped (1, out) for direct broadcast.
    k1, k2, k3, k4, k5, k6 = jax.random.split(key, 6)

    def w_init(k, fan_in, fan_out):
        bound = 1.0 / jnp.sqrt(jnp.float32(fan_in))
        w = jax.random.uniform(k, (fan_in, fan_out), jnp.float32, -bound, bound)
        return w.astype(weight_dtype)

    def b_init(k, fan_in, fan_out):
        bound = 1.0 / jnp.sqrt(jnp.float32(fan_in))
        return jax.random.uniform(k, (1, fan_out), jnp.float32, -bound, bound)

    return {
        "w1": w_init(k1, 784, 256), "b1": b_init(k2, 784, 256),
        "w2": w_init(k3, 256, 256), "b2": b_init(k4, 256, 256),
        "w3": w_init(k5, 256, 784), "b3": b_init(k6, 256, 784),
    }


if __name__ == "__main__":
    key = jax.random.PRNGKey(0)
    k_x, k_params, k_noise = jax.random.split(key, 3)

    num_timesteps = 1000
    alpha_cumprod = build_schedule(num_timesteps)
    params = build_mlp_params(k_params)

    batch = 8
    x = jax.random.normal(k_x, (batch, 784), dtype=jnp.float32)
    t = 137        # scalar timestep index

    # forward(x, t): q-sample
    out = diffusion_forward(x, t, alpha_cumprod, k_noise)
    out = jax.block_until_ready(out)
    assert out.shape == x.shape and bool(jnp.isfinite(out).all())

    # Semantic check: implied noise (out - sqrt(a)x) / sqrt(1-a) must be ~ N(0, 1).
    a = alpha_cumprod[t]
    implied_noise = (out - jnp.sqrt(a) * x) / jnp.sqrt(1.0 - a)
    m = float(jnp.mean(implied_noise))
    s = float(jnp.std(implied_noise))
    assert abs(m) < 0.1 and abs(s - 1.0) < 0.1, ("forward noise stats off", m, s)

    # reverse(x, t): the nn.Sequential MLP (t is ignored, as in the module).
    # Activations are cast to bf16 once outside and streamed bf16 end-to-end.
    xb = x.astype(jnp.bfloat16)
    rev = diffusion_reverse(xb, params)
    rev = jax.block_until_ready(rev)
    assert rev.shape == (batch, 784)

    # Reference with the same bf16 weights / bf16 operands, f32 accumulation.
    h1 = jnp.maximum(jnp.dot(xb, params["w1"],
                             preferred_element_type=jnp.float32) + params["b1"], 0.0)
    h2 = jnp.maximum(jnp.dot(h1.astype(jnp.bfloat16), params["w2"],
                             preferred_element_type=jnp.float32) + params["b2"], 0.0)
    rev_ref = jnp.dot(h2.astype(jnp.bfloat16), params["w3"],
                      preferred_element_type=jnp.float32) + params["b3"]
    assert jnp.allclose(rev.astype(jnp.float32), rev_ref,
                        atol=2e-2, rtol=2e-2), "reverse mismatch"

    print("KERNEL_OK")
</pallas_src>

<mosaic_0001>
module attributes {stable_mosaic.version = 11 : i64} {
  func.func @forward_kernel(%arg0: i32, %arg1: memref<2xf32, #tpu.memory_space<smem>>, %arg2: memref<56x128xf32, #tpu.memory_space<vmem>>, %arg3: memref<56x128xf32, #tpu.memory_space<vmem>>, %arg4: memref<56x128xf32, #tpu.memory_space<vmem>>) attributes {dimension_semantics = [#tpu.dimension_semantics<parallel>], iteration_bounds = array<i64: 1>, scalar_prefetch = 0 : i64, scratch_operands = 0 : i64, tpu.core_type = #tpu.core_type<tc>, window_params = [{transform_indices = @transform_0, window_bounds = array<i64: 2>}, {transform_indices = @transform_1, window_bounds = array<i64: 56, 128>}, {transform_indices = @transform_2, window_bounds = array<i64: 56, 128>}, {transform_indices = @transform_3, window_bounds = array<i64: 56, 128>}]} {
    %c0 = arith.constant 0 : index
    %0 = memref.load %arg1[%c0] : memref<2xf32, #tpu.memory_space<smem>>
    %c0_0 = arith.constant 0 : index
    %c0_1 = arith.constant 0 : index
    %1 = vector.load %arg2[%c0_0, %c0_1] : memref<56x128xf32, #tpu.memory_space<vmem>>, vector<56x128xf32>
    %2 = vector.broadcast %0 : f32 to vector<56x128xf32>
    %3 = arith.mulf %2, %1 : vector<56x128xf32>
    %c1 = arith.constant 1 : index
    %4 = memref.load %arg1[%c1] : memref<2xf32, #tpu.memory_space<smem>>
    %c0_2 = arith.constant 0 : index
    %c0_3 = arith.constant 0 : index
    %5 = vector.load %arg3[%c0_2, %c0_3] : memref<56x128xf32, #tpu.memory_space<vmem>>, vector<56x128xf32>
    %6 = vector.broadcast %4 : f32 to vector<56x128xf32>
    %7 = arith.mulf %6, %5 : vector<56x128xf32>
    %8 = arith.addf %3, %7 : vector<56x128xf32>
    %c0_4 = arith.constant 0 : index
    %c0_5 = arith.constant 0 : index
    %9 = vector.load %arg4[%c0_4, %c0_5] : memref<56x128xf32, #tpu.memory_space<vmem>>, vector<56x128xf32>
    tpu.vector_store %arg4[%c0_4, %c0_5], %8 {strides = array<i32>} : memref<56x128xf32, #tpu.memory_space<vmem>>, vector<56x128xf32>,
    return
  }
  func.func @transform_0(%arg0: i32) -> i32 {
    %c0_i32 = arith.constant 0 : i32
    %c0_i32_0 = arith.constant 0 : i32
    return %c0_i32 : i32
  }
  func.func @transform_1(%arg0: i32) -> (i32, i32) {
    %c0_i32 = arith.constant 0 : i32
    %c0_i32_0 = arith.constant 0 : i32
    return %arg0, %c0_i32 : i32, i32
  }
  func.func @transform_2(%arg0: i32) -> (i32, i32) {
    %c0_i32 = arith.constant 0 : i32
    %c0_i32_0 = arith.constant 0 : i32
    return %arg0, %c0_i32 : i32, i32
  }
  func.func @transform_3(%arg0: i32) -> (i32, i32) {
    %c0_i32 = arith.constant 0 : i32
    %c0_i32_0 = arith.constant 0 : i32
    return %arg0, %c0_i32 : i32, i32
  }
}

</mosaic_0001>

<bundles_post_ra>
// kernel: tpu_custom_call.1
= control target key start
LH: loop header
LB: loop body
LE: loop exit
PB: predicated region body
PF: predicated region fallthrough
CT: control target
= control target key end

     0   :  { %8 = vsyncpa [#allocation5], 0  ;;  %s273_s0 = inlined_call_operand.hbm [shape: f32[2], index: 0, kind: input, shape index: {}]   ;;  %s274_s1 = inlined_call_operand.hbm [shape: f32[56,128], index: 1, kind: input, shape index: {}]   ;;  %s275_s2 = inlined_call_operand.hbm [shape: f32[56,128], index: 2, kind: input, shape index: {}]   ;;  %s276_s3 = inlined_call_operand.hbm [shape: f32[56,128], index: 3, kind: output, shape index: {}]  }
   0x1   :  { %9 = vsyncpa [#allocation3], 0 }
   0x2   :  { %10 = vsyncpa [#allocation8], 0 }
   0x3   :  { %11 = vsyncpa [#allocation4], 0  ;;  %s17_s14 = sshll.u32 %s273_s0, 4  ;;  %s25_s17 = sshll.u32 %s274_s1, 4  ;;  %s18_s14 = int_to_ptr.hbm [resolvable:$true] %s17_s14  ;;  %s26_s17 = int_to_ptr.hbm [resolvable:$true] %s25_s17 }
   0x4   :  { %s226_s18 = smov [#allocation2]   ;;  %s227_s19 = smov [#allocation6]  }
   0x5   :  { %20 = dma.hbm_to_smem %s18_s14, 16, %s226_s18, [#allocation5]  }
   0x6   :  { %s27_s20 = sshll.u32 %s227_s19, 4  ;;  %s228_s21 = smov 128   ;;  %s28_s20 = int_to_ptr.vmem [resolvable:$true] %s27_s20 }
   0x7   :  { %s229_s22 = smov 8   ;;  %s38_s0 = sshll.u32 %s275_s2, 4  ;;  %s39_s0 = int_to_ptr.hbm [resolvable:$true] %s38_s0 }
   0x8   :  { %33 = dma.hbm_to_vmem [thread:$0]  %s26_s17, 896, %s28_s20, [#allocation3], %s228_s21, %s228_s21, %s229_s22  }
   0x9   :  { %s230_s25 = smov [#allocation7]  }
   0xa   :  { %s40_s26 = sshll.u32 %s230_s25, 4  ;;  %s41_s26 = int_to_ptr.vmem [resolvable:$true] %s40_s26 }
   0xb   :  { %46 = dma.hbm_to_vmem [thread:$0]  %s39_s0, 896, %s41_s26, [#allocation8], %s228_s21, %s228_s21, %s229_s22  }
   0xc   :  { %218 = dma.done.wait [#allocation5], 16  }
   0xd   :  { %219 = vsyncadd [#allocation5], 4294967280 }
   0xe   :  { %220 = dma.done.wait [#allocation3], 896  }
   0xf   :  { %221 = vsyncadd [#allocation3], 4294966400 }
  0x10   :  { %222 = dma.done.wait [#allocation8], 896  }
  0x11   :  { %223 = vsyncadd [#allocation8], 4294966400 }
  0x12   :  { %59 = sfence }
  0x13   :  { %s60_s1 = sld [smem:[#allocation2]]  ;;  %v61_v0 = vld [vmem:[#allocation6] sm:$0xff]  ;;  %v77_v1 = vld [vmem:[#allocation7] sm:$0xff]  ;;  %v62_v2 = vld [vmem:[#allocation6 + $0x8] sm:$0xff]  ;;  %s231_s2 = smov [#allocation9]  }
  0x14   :  { %s127_s27 = sld [smem:[#allocation2 + $0x1]]  ;;  %v78_v3 = vld [vmem:[#allocation7 + $0x8] sm:$0xff]  ;;  %v63_v4 = vld [vmem:[#allocation6 + $0x10] sm:$0xff]  ;;  %v79_v5 = vld [vmem:[#allocation7 + $0x10] sm:$0xff]  ;;  %s110_s28 = sshll.u32 %s231_s2, 4  ;;  %s111_s28 = int_to_ptr.vmem [resolvable:$true] %s110_s28 }
  0x15   :  { %v64_v6 = vld [vmem:[#allocation6 + $0x18] sm:$0xff]  ;;  %v80_v7 = vld [vmem:[#allocation7 + $0x18] sm:$0xff]  ;;  %v65_v9 = vld [vmem:[#allocation6 + $0x20] sm:$0xff]  ;;  %s112_s4 = sshll.u32 %s276_s3, 4  ;;  %s113_s4 = int_to_ptr.hbm [resolvable:$true] %s112_s4 }
  0x16   :  { %v81_v10 = vld [vmem:[#allocation7 + $0x20] sm:$0xff]  ;;  %v66_v11 = vld [vmem:[#allocation6 + $0x28] sm:$0xff]  ;;  %v82_v16 = vld [vmem:[#allocation7 + $0x28] sm:$0xff] }
  0x17   :  { %v67_v21 = vld [vmem:[#allocation6 + $0x30] sm:$0xff]  ;;  %v83_v22 = vld [vmem:[#allocation7 + $0x30] sm:$0xff] }
  0x19   :  { %v68_v8 = vstv %s60_s1 }
  0x1a   :  { %v69_v12 = vmul.f32 %v68_v8, %v61_v0  ;;  %v84_v13 = vstv %s127_s27  ;;  %v70_v14 = vmul.f32 %v68_v8, %v62_v2  ;;  %v71_v15 = vmul.f32 %v68_v8, %v63_v4 }
  0x1b   :  { %v85_v17 = vmul.f32 %v84_v13, %v77_v1  ;;  %v86_v18 = vmul.f32 %v84_v13, %v78_v3  ;;  %v87_v19 = vmul.f32 %v84_v13, %v79_v5  ;;  %v72_v20 = vmul.f32 %v68_v8, %v64_v6 }
  0x1c   :  { %v88_v23 = vmul.f32 %v84_v13, %v80_v7  ;;  %v73_v24 = vmul.f32 %v68_v8, %v65_v9  ;;  %v89_v25 = vmul.f32 %v84_v13, %v81_v10  ;;  %v74_v26 = vmul.f32 %v68_v8, %v66_v11 }
  0x1d   :  { %v92_v27 = vadd.f32 %v85_v17, %v69_v12  ;;  %v93_v28 = vadd.f32 %v86_v18, %v70_v14  ;;  %v94_v29 = vadd.f32 %v87_v19, %v71_v15  ;;  %v90_v30 = vmul.f32 %v84_v13, %v82_v16 }
  0x1e   :  { %v95_v31 = vadd.f32 %v88_v23, %v72_v20  ;;  %v75_v32 = vmul.f32 %v68_v8, %v67_v21  ;;  %v91_v33 = vmul.f32 %v84_v13, %v83_v22  ;;  %v96_v34 = vadd.f32 %v89_v25, %v73_v24 }
  0x1f   :  { %99 = vst [vmem:[#allocation9] sm:$0xff] %v92_v27  ;;  %v97_v35 = vadd.f32 %v90_v30, %v74_v26 }
  0x20   :  { %100 = vst [vmem:[#allocation9 + $0x8] sm:$0xff] %v93_v28  ;;  %v98_v36 = vadd.f32 %v91_v33, %v75_v32 }
  0x21   :  { %101 = vst [vmem:[#allocation9 + $0x10] sm:$0xff] %v94_v29 }
  0x22   :  { %102 = vst [vmem:[#allocation9 + $0x18] sm:$0xff] %v95_v31 }
  0x23   :  { %103 = vst [vmem:[#allocation9 + $0x20] sm:$0xff] %v96_v34 }
  0x24   :  { %104 = vst [vmem:[#allocation9 + $0x28] sm:$0xff] %v97_v35 }
  0x25   :  { %105 = vst [vmem:[#allocation9 + $0x30] sm:$0xff] %v98_v36 }
  0x26   :  { %118 = dma.vmem_to_hbm [thread:$0]  %s111_s28, 896, %s113_s4, [#allocation4], %s228_s21, %s228_s21, %s229_s22  }
  0x27   :  { %224 = dma.done.wait [#allocation4], 896  }
  0x28   :  { %225 = vsyncadd [#allocation4], 4294966400 }
  0x29   :  { %123 = vsyncpa [#allocation3], 1 }
  0x2a   :  { %124 = vsyncpa [#allocation8], 1 }
  0x2b   :  { %125 = vsyncpa [#allocation4], 1 }
  0x2c   :  { %126 = vsyncpa [#allocation5], 1 }

</bundles_post_ra>
